<compile_context>
chip_gen: v5e
topology: v5e:2x2
jax: 0.10.0
libtpu: 0.0.40
codegen_flags: <defaults>
</compile_context>

<pallas_src>
import numpy as np
import jax
import jax.numpy as jnp
from jax.experimental import pallas as pl
from jax.experimental.pallas import tpu as pltpu

MARGIN = 0.1

# Conservative pipeline-VMEM budget: 2 inputs x 2 buffers x tile_bytes must stay
# under this.  8 MiB fits the smallest default scoped VMEM (v5e: 16 MiB) with
# headroom, and is trivially fine on v6e (32 MiB) / v7x (32 MiB of 64 MiB).
_VMEM_PIPELINE_BUDGET = 8 * 1024 * 1024
_TARGET_ROWS_PER_BLOCK = 512


def _choose_groups_per_block(label_num, group_size, D, itemsize):
    """Largest divisor G of label_num s.t. the fused tile fits the VMEM budget,
    stopping once G*group_size reaches the target row count."""
    best = 1
    for g in range(1, label_num + 1):
        if label_num % g != 0:
            continue
        tile_bytes = g * group_size * D * itemsize
        if g > 1 and 4 * tile_bytes > _VMEM_PIPELINE_BUDGET:
            break
        best = g
        if g * group_size >= _TARGET_ROWS_PER_BLOCK:
            break
    return best


def _make_kernel(groups_per_block, group_size, margin):
    inv_gs2 = 1.0 / float(group_size * group_size)

    def kernel(f1_ref, f2_ref, o_ref):
        # diff-before-reduce: mean(f1) - mean(f2) == mean(f1 - f2)
        diff = f1_ref[...].astype(jnp.float32) - f2_ref[...].astype(jnp.float32)
        d = diff.shape[-1]
        diff = diff.reshape(groups_per_block, group_size, d)
        s = jnp.sum(diff, axis=1)                       # (G, D) per-group row sum
        sq = jnp.sum(s * s, axis=1, keepdims=True)      # (G, 1)
        dist = sq * jnp.float32(inv_gs2)                # squared L2 of mean-diff
        hinge = jnp.maximum(dist - jnp.float32(margin), jnp.float32(0.0))
        partial = jnp.sum(hinge)                        # this block's contribution
        # Lane-dense, unmasked store of the block partial (wrapper reduces).
        o_ref[...] = jnp.broadcast_to(partial, o_ref.shape).astype(jnp.float32)

    return kernel


def hetero_loss_l2(feat1, feat2, label1, label2=None, margin=MARGIN, label_num=None):
    """Pallas implementation of hetero_loss(dist_type='l2').forward."""
    assert feat1.shape == feat2.shape and feat1.ndim == 2
    N, D = feat1.shape

    # label_num is a static (trace-time) quantity, like in the PyTorch module.
    # Pass label_num= explicitly if calling under jax.jit with traced labels.
    if label_num is None:
        label_num = int(len(np.unique(np.asarray(label1))))
    assert N % label_num == 0, "N must be divisible by the number of unique labels"
    group_size = N // label_num

    itemsize = jnp.dtype(feat1.dtype).itemsize
    groups_per_block = _choose_groups_per_block(label_num, group_size, D, itemsize)
    rows_per_block = groups_per_block * group_size

    # Mosaic tiling constraint: the block sublane dim must be a multiple of the
    # packing granule (8 for f32, 16 for bf16) or equal the full array extent.
    # Fall back to a single full-extent block if the fused rows don't align.
    sub_mult = {4: 8, 2: 16, 1: 32}.get(itemsize, 8)
    if rows_per_block % sub_mult != 0 and rows_per_block != N:
        groups_per_block = label_num
        rows_per_block = N
    num_blocks = label_num // groups_per_block

    kernel = _make_kernel(groups_per_block, group_size, float(margin))

    partials = pl.pallas_call(
        kernel,
        out_shape=jax.ShapeDtypeStruct((1, num_blocks * 128), jnp.float32),
        grid_spec=pltpu.PrefetchScalarGridSpec(
            num_scalar_prefetch=0,
            grid=(num_blocks,),
            in_specs=[
                pl.BlockSpec((rows_per_block, D), lambda i: (i, 0)),
                pl.BlockSpec((rows_per_block, D), lambda i: (i, 0)),
            ],
            out_specs=pl.BlockSpec((1, 128), lambda i: (0, i)),
        ),
        compiler_params=pltpu.CompilerParams(
            dimension_semantics=("parallel",),  # independent blocks; both TCs on v7x
        ),
    )(feat1, feat2)

    # Each block broadcast its scalar partial across its 128 output lanes.
    return jnp.sum(partials.reshape(num_blocks, 128)[:, 0])


def _reference(feat1, feat2, label1, margin=MARGIN):
    feat1 = np.asarray(feat1, dtype=np.float64)
    feat2 = np.asarray(feat2, dtype=np.float64)
    label_num = len(np.unique(np.asarray(label1)))
    chunks1 = np.array_split(feat1, label_num, axis=0)
    chunks2 = np.array_split(feat2, label_num, axis=0)
    dist = 0.0
    for i in range(label_num):
        c1 = chunks1[i].mean(axis=0)
        c2 = chunks2[i].mean(axis=0)
        dist += max(0.0, float(np.sum((c1 - c2) ** 2)) - margin)
    return dist


if __name__ == "__main__":
    # TODO(synk): only dist_type='l2' is implemented ('cos'/'l1' branches of the
    # module are not exercised by its default configuration).
    key = jax.random.PRNGKey(0)

    # Test 1: small shapes (N=16, D=128, 2 identities of 8 samples each) — single block.
    k1, k2, k3, k4 = jax.random.split(key, 4)
    N, D, label_num = 16, 128, 2
    feat1 = jax.random.normal(k1, (N, D), dtype=jnp.float32)
    feat2 = jax.random.normal(k2, (N, D), dtype=jnp.float32)
    label1 = jnp.repeat(jnp.arange(label_num, dtype=jnp.int32), N // label_num)
    label2 = label1

    loss = hetero_loss_l2(feat1, feat2, label1, label2)
    loss = jax.block_until_ready(loss)
    ref = _reference(feat1, feat2, label1)
    np.testing.assert_allclose(float(loss), ref, rtol=1e-4, atol=1e-5)

    # Test 2: multi-block path (fused groups, grid > 1, parallel axis).
    N2, D2, label_num2 = 1024, 256, 8
    feat1b = 0.05 * jax.random.normal(k3, (N2, D2), dtype=jnp.float32)
    feat2b = 0.05 * jax.random.normal(k4, (N2, D2), dtype=jnp.float32)
    label1b = jnp.repeat(jnp.arange(label_num2, dtype=jnp.int32), N2 // label_num2)

    loss2 = hetero_loss_l2(feat1b, feat2b, label1b, label1b)
    loss2 = jax.block_until_ready(loss2)
    ref2 = _reference(feat1b, feat2b, label1b)
    np.testing.assert_allclose(float(loss2), ref2, rtol=1e-4, atol=1e-5)

    print("KERNEL_OK")
</pallas_src>

<mosaic_0001>
module attributes {stable_mosaic.version = 11 : i64} {
  func.func @kernel(%arg0: i32, %arg1: memref<16x128xf32, #tpu.memory_space<vmem>>, %arg2: memref<16x128xf32, #tpu.memory_space<vmem>>, %arg3: memref<1x128xf32, #tpu.memory_space<vmem>>) attributes {dimension_semantics = [#tpu.dimension_semantics<parallel>], iteration_bounds = array<i64: 1>, scalar_prefetch = 0 : i64, scratch_operands = 0 : i64, tpu.core_type = #tpu.core_type<tc>, window_params = [{transform_indices = @transform_0, window_bounds = array<i64: 16, 128>}, {transform_indices = @transform_1, window_bounds = array<i64: 16, 128>}, {transform_indices = @transform_2, window_bounds = array<i64: 1, 128>}]} {
    %c0 = arith.constant 0 : index
    %c0_0 = arith.constant 0 : index
    %0 = vector.load %arg1[%c0, %c0_0] : memref<16x128xf32, #tpu.memory_space<vmem>>, vector<16x128xf32>
    %c0_1 = arith.constant 0 : index
    %c0_2 = arith.constant 0 : index
    %1 = vector.load %arg2[%c0_1, %c0_2] : memref<16x128xf32, #tpu.memory_space<vmem>>, vector<16x128xf32>
    %2 = arith.subf %0, %1 : vector<16x128xf32>
    %3 = vector.shape_cast %2 : vector<16x128xf32> to vector<2x8x128xf32>
    %cst = arith.constant dense<0.000000e+00> : vector<2x128xf32>
    %4 = vector.multi_reduction <add>, %3, %cst [1] : vector<2x8x128xf32> to vector<2x128xf32>
    %5 = arith.mulf %4, %4 : vector<2x128xf32>
    %cst_3 = arith.constant dense<0.000000e+00> : vector<2xf32>
    %6 = vector.multi_reduction <add>, %5, %cst_3 [1] : vector<2x128xf32> to vector<2xf32>
    %7 = vector.shape_cast %6 : vector<2xf32> to vector<2x1xf32>
    %cst_4 = arith.constant 1.562500e-02 : f32
    %8 = vector.broadcast %cst_4 : f32 to vector<2x1xf32>
    %9 = arith.mulf %7, %8 : vector<2x1xf32>
    %cst_5 = arith.constant 1.000000e-01 : f32
    %10 = vector.broadcast %cst_5 : f32 to vector<2x1xf32>
    %11 = arith.subf %9, %10 : vector<2x1xf32>
    %cst_6 = arith.constant 0.000000e+00 : f32
    %12 = vector.broadcast %cst_6 : f32 to vector<2x1xf32>
    %13 = arith.maximumf %11, %12 : vector<2x1xf32>
    %14 = vector.shape_cast %13 : vector<2x1xf32> to vector<1x2x1xf32>
    %cst_7 = arith.constant dense<0.000000e+00> : vector<1xf32>
    %15 = vector.multi_reduction <add>, %14, %cst_7 [1, 2] : vector<1x2x1xf32> to vector<1xf32>
    %16 = vector.shape_cast %15 : vector<1xf32> to vector<1x1x1xf32>
    %17 = vector.extract %16[0, 0, 0] : f32 from vector<1x1x1xf32>
    %18 = vector.broadcast %17 : f32 to vector<1x128xf32>
    %c0_8 = arith.constant 0 : index
    %c0_9 = arith.constant 0 : index
    %19 = vector.load %arg3[%c0_8, %c0_9] : memref<1x128xf32, #tpu.memory_space<vmem>>, vector<1x128xf32>
    tpu.vector_store %arg3[%c0_8, %c0_9], %18 {strides = array<i32>} : memref<1x128xf32, #tpu.memory_space<vmem>>, vector<1x128xf32>,
    return
  }
  func.func @transform_0(%arg0: i32) -> (i32, i32) {
    %c0_i32 = arith.constant 0 : i32
    %c0_i32_0 = arith.constant 0 : i32
    return %arg0, %c0_i32 : i32, i32
  }
  func.func @transform_1(%arg0: i32) -> (i32, i32) {
    %c0_i32 = arith.constant 0 : i32
    %c0_i32_0 = arith.constant 0 : i32
    return %arg0, %c0_i32 : i32, i32
  }
  func.func @transform_2(%arg0: i32) -> (i32, i32) {
    %c0_i32 = arith.constant 0 : i32
    %c0_i32_0 = arith.constant 0 : i32
    return %c0_i32, %arg0 : i32, i32
  }
}

</mosaic_0001>

<bundles_post_ra>
// kernel: tpu_custom_call.1
= control target key start
LH: loop header
LB: loop body
LE: loop exit
PB: predicated region body
PF: predicated region fallthrough
CT: control target
= control target key end

     0   :  { %7 = vsyncpa [#allocation3], 0  ;;  %s222_s0 = inlined_call_operand.hbm [shape: f32[16,128], index: 0, kind: input, shape index: {}]   ;;  %s223_s1 = inlined_call_operand.hbm [shape: f32[16,128], index: 1, kind: input, shape index: {}]   ;;  %s224_s2 = inlined_call_operand.hbm [shape: f32[1,128], index: 2, kind: output, shape index: {}]  }
   0x1   :  { %8 = vsyncpa [#allocation6], 0 }
   0x2   :  { %9 = vsyncpa [#allocation4], 0  ;;  %s14_s11 = sshll.u32 %s222_s0, 4  ;;  %s193_s12 = smov [#allocation2]   ;;  %s15_s11 = int_to_ptr.hbm [resolvable:$true] %s14_s11 }
   0x3   :  { %s16_s13 = sshll.u32 %s193_s12, 4  ;;  %s27_s16 = sshll.u32 %s223_s1, 4  ;;  %s17_s13 = int_to_ptr.vmem [resolvable:$true] %s16_s13  ;;  %s28_s16 = int_to_ptr.hbm [resolvable:$true] %s27_s16 }
   0x4   :  { %s194_s17 = smov 128   ;;  %s195_s18 = smov 8  }
   0x5   :  { %22 = dma.hbm_to_vmem [thread:$0]  %s15_s11, 256, %s17_s13, [#allocation3], %s194_s17, %s194_s17, %s195_s18  }
   0x6   :  { %s196_s19 = smov [#allocation5]  }
   0x7   :  { %s29_s20 = sshll.u32 %s196_s19, 4  ;;  %s30_s20 = int_to_ptr.vmem [resolvable:$true] %s29_s20 }
   0x8   :  { %35 = dma.hbm_to_vmem [thread:$0]  %s28_s16, 256, %s30_s20, [#allocation6], %s194_s17, %s194_s17, %s195_s18  }
   0x9   :  { %187 = dma.done.wait [#allocation3], 256  }
   0xa   :  { %188 = vsyncadd [#allocation3], 4294967040 }
   0xb   :  { %189 = dma.done.wait [#allocation6], 256  }
   0xc   :  { %190 = vsyncadd [#allocation6], 4294967040  ;;  %v44_v0 = vld [vmem:[#allocation2] sm:$0xff]  ;;  %v45_v1 = vld [vmem:[#allocation2 + $0x8] sm:$0xff]  ;;  %vm66_vm0 = vcmask 1041409   ;;  %vm69_vm1 = vcmask 1041408  }
   0xd   :  { %v46_v2 = vld [vmem:[#allocation5] sm:$0xff]  ;;  %v47_v3 = vld [vmem:[#allocation5 + $0x8] sm:$0xff]  ;;  %vm76_vm2 = vcmask 1024   ;;  %s197_s0 = smov [#allocation7]   ;;  %s96_s23 = sshll.u32 %s224_s2, 4  ;;  %s97_s23 = int_to_ptr.hbm [resolvable:$true] %s96_s23 }
   0xe   :  { %v48_v4 = vsub.f32 %v44_v0, %v46_v2  ;;  %v49_v5 = vsub.f32 %v45_v1, %v47_v3  ;;  %s94_s1 = sshll.u32 %s197_s0, 4  ;;  %s95_s1 = int_to_ptr.vmem [resolvable:$true] %s94_s1 }
  0x10   :  { %v50_v6 = vrot.slane %v48_v4, 4  ;;  %v56_v7 = vrot.slane %v49_v5, 4 }
  0x12   :  { %v51_v8 = vadd.f32 %v50_v6, %v48_v4  ;;  %v57_v9 = vadd.f32 %v56_v7, %v49_v5 }
  0x14   :  { %v52_v10 = vrot.slane %v51_v8, 2  ;;  %v58_v11 = vrot.slane %v57_v9, 2 }
  0x16   :  { %v53_v12 = vadd.f32 %v52_v10, %v51_v8  ;;  %v59_v13 = vadd.f32 %v58_v11, %v57_v9 }
  0x18   :  { %v54_v14 = vrot.slane %v53_v12, 1  ;;  %v60_v15 = vrot.slane %v59_v13, 1 }
  0x1a   :  { %v55_v16 = vadd.f32 %v54_v14, %v53_v12  ;;  %v61_v17 = vadd.f32 %v60_v15, %v59_v13 }
  0x1c   :  { %v62_v18 = vmul.f32 %v55_v16, %v55_v16  ;;  %v63_v19 = vmul.f32 %v61_v17, %v61_v17 }
  0x1e   :  { %v67_v20 = vsel %vm66_vm0, %v63_v19, %v62_v18 }
  0x1f   :  { %v70_v21 = vsel %vm69_vm1, %v67_v20, 0.0 }
  0x20   :  { %71 = vadd.xlane.f32.xlu0 %v70_v21 }
  0x93   :  { %v72_v22 = vpop.xlane.xlu0 %71 }
  0x94   :  { %v73_v23 = vmul.f32 0.015625, %v72_v22 }
  0x96   :  { %v107_v24 = vadd.f32 -0.1, %v73_v23 }
  0x98   :  { %v75_v25 = vmax.f32 %v107_v24, 0.0 }
  0x9a   :  { %v77_v26 = vsel %vm76_vm2, %v75_v25, 0.0 }
  0x9b   :  { %78 = vadd.xlane.f32.xlu0 %v77_v26 }
 0x10e   :  { %v79_v27 = vpop.xlane.xlu0 %78 }
 0x10f   :  { %v80_v28 = vrot.slane %v79_v27, 4 }
 0x111   :  { %v81_v29 = vadd.f32 %v80_v28, %v79_v27 }
 0x113   :  { %v82_v30 = vrot.slane %v81_v29, 2 }
 0x115   :  { %v83_v31 = vadd.f32 %v82_v30, %v81_v29 }
 0x117   :  { %v84_v32 = vrot.slane %v83_v31, 1 }
 0x119   :  { %v85_v33 = vadd.f32 %v84_v32, %v83_v31 }
 0x11b   :  { %108 = vpush %v85_v33 }
 0x14c   :  { %s109_s24 = spop %108 }
 0x14d   :  { %v87_v34 = vstv %s109_s24 }
 0x14e   :  { %88 = vst [vmem:[#allocation7] sm:$0x1] %v87_v34 }
 0x14f   :  { %99 = dma.vmem_to_hbm [thread:$0]  %s95_s1, 16, %s97_s23, [#allocation4]  }
 0x150   :  { %191 = dma.done.wait [#allocation4], 16  }
 0x151   :  { %192 = vsyncadd [#allocation4], 4294967280 }
 0x152   :  { %104 = vsyncpa [#allocation3], 1 }
 0x153   :  { %105 = vsyncpa [#allocation6], 1 }
 0x154   :  { %106 = vsyncpa [#allocation4], 1 }

</bundles_post_ra>
